<compile_context>
chip_gen: v7x
topology: tpu7x:2x2x1
jax: 0.10.0
libtpu: 0.0.40
codegen_flags: <defaults>
</compile_context>

<pallas_src>
import jax
import jax.numpy as jnp
from jax.experimental import pallas as pl
from jax.experimental.pallas import tpu as pltpu


def mlp_kernel(x_ref, w1_ref, b1_ref, w2_ref, b2_ref, w3_ref, b3_ref, o_ref):
    # x_ref: [n_in, bt] feature-major -> batch on the 128-lane axis (lane-dense).
    x = x_ref[...]
    h1 = jnp.maximum(
        jnp.dot(w1_ref[...], x, preferred_element_type=jnp.float32)
        + b1_ref[...], 0.0)                                           # [15, bt]
    h2 = jnp.maximum(
        jnp.dot(w2_ref[...], h1, preferred_element_type=jnp.float32)
        + b2_ref[...], 0.0)                                           # [8, bt]
    # TODO(synk): layers 2/3 could be VPU broadcast-FMAs instead of tiny MXU
    # matmuls once the step is compute-latency-bound; irrelevant while the
    # kernel is overhead/HBM-bound.
    h3 = jnp.maximum(
        jnp.dot(w3_ref[...], h2, preferred_element_type=jnp.float32)
        + b3_ref[...], 0.0)                                           # [1, bt]
    o_ref[...] = h3.astype(o_ref.dtype)                               # lane-dense store


def _round_up(a, m):
    return (a + m - 1) // m * m


def _num_tensorcores():
    """2 on v7x-class chips (2 TensorCores/chip), else 1 (v5e/v6e)."""
    try:
        kind = jax.devices()[0].device_kind.lower()
    except Exception:
        return 1
    return 2 if ("v7" in kind or "7x" in kind) else 1


def _pick_batch_tile(b_padded, target, n_cores):
    """Largest multiple-of-128 tile <= target that divides b_padded.
    Only splits a single-step grid in half when the chip has 2 TensorCores."""
    bt = min(_round_up(target, 128), b_padded)
    bt -= bt % 128
    bt = max(bt, 128)
    while b_padded % bt:
        bt -= 128
    if n_cores >= 2 and b_padded // bt == 1 and bt % 256 == 0:
        bt //= 2        # v7x megacore: give both TensorCores a tile
    return bt


def net_forward_feature_major(x_t, params, *, batch_tile=8192):
    """x_t: [n_in, B] float32, feature-major (batch on the lane axis).
    Returns [B, 1] float32 matching the PyTorch module's output."""
    n_in, B = x_t.shape
    b_padded = _round_up(B, 128)
    if b_padded != B:
        # Pad ragged batches instead of one huge full-extent tile (VMEM-safe);
        # padded rows are computed then sliced off below.
        x_t = jnp.pad(x_t, ((0, 0), (0, b_padded - B)))

    bt = _pick_batch_tile(b_padded, batch_tile, _num_tensorcores())
    grid = (b_padded // bt,)

    w1, b1 = params["w1"], params["b1"]   # [15, n_in], [15, 1]
    w2, b2 = params["w2"], params["b2"]   # [8, 15],    [8, 1]
    w3, b3 = params["w3"], params["b3"]   # [1, 8],     [1, 1]

    # Constant block index => weights/biases stay resident in VMEM.
    full = lambda a: pl.BlockSpec(a.shape, lambda i: (0, 0))

    out_row = pl.pallas_call(
        mlp_kernel,
        out_shape=jax.ShapeDtypeStruct((1, b_padded), jnp.float32),
        grid_spec=pltpu.PrefetchScalarGridSpec(
            num_scalar_prefetch=0,
            grid=grid,
            in_specs=[
                pl.BlockSpec((n_in, bt), lambda i: (0, i)),   # lane-dense x tile
                full(w1), full(b1),
                full(w2), full(b2),
                full(w3), full(b3),
            ],
            out_specs=pl.BlockSpec((1, bt), lambda i: (0, i)),  # lane-dense store
        ),
        compiler_params=pltpu.CompilerParams(
            dimension_semantics=("parallel",)),
    )(x_t, w1, b1, w2, b2, w3, b3)

    # Layout plumbing only: drop padding, (1, B) row -> (B, 1) column.
    return out_row[0, :B].reshape(B, 1)


def net_forward(x, params, *, batch_tile=8192):
    """x: [B, n_in] float32 (PyTorch layout). Transposed once in the wrapper so
    the kernel sees a feature-major block; producers that can emit [n_in, B]
    directly should call net_forward_feature_major to skip this."""
    return net_forward_feature_major(x.T, params, batch_tile=batch_tile)


def init_params(key, n_entradas):
    """Mirrors PyTorch nn.Linear: [out, in] weights, U(-1/sqrt(fan_in), ..)
    init; biases stored as [out, 1] columns for lane-broadcast in the kernel."""
    ks = jax.random.split(key, 6)

    def lin(kw, kb, fan_in, fan_out):
        bound = 1.0 / (fan_in ** 0.5)
        w = jax.random.uniform(kw, (fan_out, fan_in), jnp.float32, -bound, bound)
        b = jax.random.uniform(kb, (fan_out, 1), jnp.float32, -bound, bound)
        return w, b

    w1, b1 = lin(ks[0], ks[1], n_entradas, 15)
    w2, b2 = lin(ks[2], ks[3], 15, 8)
    w3, b3 = lin(ks[4], ks[5], 8, 1)
    return dict(w1=w1, b1=b1, w2=w2, b2=b2, w3=w3, b3=b3)


def net_forward_ref(x, p):
    h1 = jnp.maximum(x @ p["w1"].T + p["b1"][:, 0], 0.0)
    h2 = jnp.maximum(h1 @ p["w2"].T + p["b2"][:, 0], 0.0)
    return jnp.maximum(h2 @ p["w3"].T + p["b3"][:, 0], 0.0)   # [B, 1]


if __name__ == "__main__":
    key = jax.random.PRNGKey(0)
    n_entradas = 16
    kx, kx2, kp = jax.random.split(key, 3)
    params = init_params(kp, n_entradas)

    # Batch that is a multiple of 128 (single large tile on v5e/v6e,
    # split across both TensorCores on v7x).
    batch = 512
    x = jax.random.normal(kx, (batch, n_entradas), jnp.float32)
    out = jax.block_until_ready(net_forward(x, params))
    ref = net_forward_ref(x, params)
    assert out.shape == (batch, 1)
    assert jnp.allclose(out, ref, atol=1e-5, rtol=1e-5)

    # Ragged batch: exercises the pad-to-128 path (no full-extent fallback).
    batch2 = 300
    x2 = jax.random.normal(kx2, (batch2, n_entradas), jnp.float32)
    out2 = jax.block_until_ready(net_forward(x2, params))
    ref2 = net_forward_ref(x2, params)
    assert out2.shape == (batch2, 1)
    assert jnp.allclose(out2, ref2, atol=1e-5, rtol=1e-5)

    print("KERNEL_OK")
</pallas_src>

<mosaic_0001>
module attributes {stable_mosaic.version = 11 : i64} {
  func.func @mlp_kernel(%arg0: i32, %arg1: memref<16x512xf32, #tpu.memory_space<vmem>>, %arg2: memref<15x16xf32, #tpu.memory_space<vmem>>, %arg3: memref<15x1xf32, #tpu.memory_space<vmem>>, %arg4: memref<8x15xf32, #tpu.memory_space<vmem>>, %arg5: memref<8x1xf32, #tpu.memory_space<vmem>>, %arg6: memref<1x8xf32, #tpu.memory_space<vmem>>, %arg7: memref<1x1xf32, #tpu.memory_space<vmem>>, %arg8: memref<1x512xf32, #tpu.memory_space<vmem>>) attributes {dimension_semantics = [#tpu.dimension_semantics<parallel>], iteration_bounds = array<i64: 1>, scalar_prefetch = 0 : i64, scratch_operands = 0 : i64, tpu.core_type = #tpu.core_type<tc>, window_params = [{transform_indices = @transform_0, window_bounds = array<i64: 16, 512>}, {pipeline_mode = #tpu.pipeline_mode<synchronous>, transform_indices = @transform_1, window_bounds = array<i64: 15, 16>}, {pipeline_mode = #tpu.pipeline_mode<synchronous>, transform_indices = @transform_2, window_bounds = array<i64: 15, 1>}, {pipeline_mode = #tpu.pipeline_mode<synchronous>, transform_indices = @transform_3, window_bounds = array<i64: 8, 15>}, {pipeline_mode = #tpu.pipeline_mode<synchronous>, transform_indices = @transform_4, window_bounds = array<i64: 8, 1>}, {pipeline_mode = #tpu.pipeline_mode<synchronous>, transform_indices = @transform_5, window_bounds = array<i64: 1, 8>}, {pipeline_mode = #tpu.pipeline_mode<synchronous>, transform_indices = @transform_6, window_bounds = array<i64: 1, 1>}, {transform_indices = @transform_7, window_bounds = array<i64: 1, 512>}]} {
    %c0 = arith.constant 0 : index
    %c0_0 = arith.constant 0 : index
    %0 = vector.load %arg1[%c0, %c0_0] : memref<16x512xf32, #tpu.memory_space<vmem>>, vector<16x512xf32>
    %c0_1 = arith.constant 0 : index
    %c0_2 = arith.constant 0 : index
    %1 = vector.load %arg2[%c0_1, %c0_2] : memref<15x16xf32, #tpu.memory_space<vmem>>, vector<15x16xf32>
    %cst = arith.constant dense<0.000000e+00> : vector<15x512xf32>
    %2 = tpu.matmul %1, %0, %cst {dimension_numbers = #tpu.dot_dimension_numbers<[1], [0], [0], [1], [0, 0, 1, 1], [], []>} : vector<15x16xf32>, vector<16x512xf32>, vector<15x512xf32> -> vector<15x512xf32>
    %c0_3 = arith.constant 0 : index
    %c0_4 = arith.constant 0 : index
    %3 = vector.load %arg3[%c0_3, %c0_4] : memref<15x1xf32, #tpu.memory_space<vmem>>, vector<15x1xf32>
    %4 = vector.broadcast %3 : vector<15x1xf32> to vector<15x512xf32>
    %5 = arith.addf %2, %4 : vector<15x512xf32>
    %cst_5 = arith.constant 0.000000e+00 : f32
    %6 = vector.broadcast %cst_5 : f32 to vector<15x512xf32>
    %7 = arith.maximumf %5, %6 : vector<15x512xf32>
    %c0_6 = arith.constant 0 : index
    %c0_7 = arith.constant 0 : index
    %8 = vector.load %arg4[%c0_6, %c0_7] : memref<8x15xf32, #tpu.memory_space<vmem>>, vector<8x15xf32>
    %cst_8 = arith.constant dense<0.000000e+00> : vector<8x512xf32>
    %9 = tpu.matmul %8, %7, %cst_8 {dimension_numbers = #tpu.dot_dimension_numbers<[1], [0], [0], [1], [0, 0, 1, 1], [], []>} : vector<8x15xf32>, vector<15x512xf32>, vector<8x512xf32> -> vector<8x512xf32>
    %c0_9 = arith.constant 0 : index
    %c0_10 = arith.constant 0 : index
    %10 = vector.load %arg5[%c0_9, %c0_10] : memref<8x1xf32, #tpu.memory_space<vmem>>, vector<8x1xf32>
    %11 = vector.broadcast %10 : vector<8x1xf32> to vector<8x512xf32>
    %12 = arith.addf %9, %11 : vector<8x512xf32>
    %cst_11 = arith.constant 0.000000e+00 : f32
    %13 = vector.broadcast %cst_11 : f32 to vector<8x512xf32>
    %14 = arith.maximumf %12, %13 : vector<8x512xf32>
    %c0_12 = arith.constant 0 : index
    %c0_13 = arith.constant 0 : index
    %15 = vector.load %arg6[%c0_12, %c0_13] : memref<1x8xf32, #tpu.memory_space<vmem>>, vector<1x8xf32>
    %cst_14 = arith.constant dense<0.000000e+00> : vector<1x512xf32>
    %16 = tpu.matmul %15, %14, %cst_14 {dimension_numbers = #tpu.dot_dimension_numbers<[1], [0], [0], [1], [0, 0, 1, 1], [], []>} : vector<1x8xf32>, vector<8x512xf32>, vector<1x512xf32> -> vector<1x512xf32>
    %c0_15 = arith.constant 0 : index
    %c0_16 = arith.constant 0 : index
    %17 = vector.load %arg7[%c0_15, %c0_16] : memref<1x1xf32, #tpu.memory_space<vmem>>, vector<1x1xf32>
    %18 = vector.broadcast %17 : vector<1x1xf32> to vector<1x512xf32>
    %19 = arith.addf %16, %18 : vector<1x512xf32>
    %cst_17 = arith.constant 0.000000e+00 : f32
    %20 = vector.broadcast %cst_17 : f32 to vector<1x512xf32>
    %21 = arith.maximumf %19, %20 : vector<1x512xf32>
    %c0_18 = arith.constant 0 : index
    %c0_19 = arith.constant 0 : index
    %22 = vector.load %arg8[%c0_18, %c0_19] : memref<1x512xf32, #tpu.memory_space<vmem>>, vector<1x512xf32>
    tpu.vector_store %arg8[%c0_18, %c0_19], %21 {strides = array<i32>} : memref<1x512xf32, #tpu.memory_space<vmem>>, vector<1x512xf32>,
    return
  }
  func.func @transform_0(%arg0: i32) -> (i32, i32) {
    %c0_i32 = arith.constant 0 : i32
    %c0_i32_0 = arith.constant 0 : i32
    return %c0_i32, %arg0 : i32, i32
  }
  func.func @transform_1(%arg0: i32) -> (i32, i32) {
    %c0_i32 = arith.constant 0 : i32
    %c0_i32_0 = arith.constant 0 : i32
    %c0_i32_1 = arith.constant 0 : i32
    return %c0_i32, %c0_i32_0 : i32, i32
  }
  func.func @transform_2(%arg0: i32) -> (i32, i32) {
    %c0_i32 = arith.constant 0 : i32
    %c0_i32_0 = arith.constant 0 : i32
    %c0_i32_1 = arith.constant 0 : i32
    return %c0_i32, %c0_i32_0 : i32, i32
  }
  func.func @transform_3(%arg0: i32) -> (i32, i32) {
    %c0_i32 = arith.constant 0 : i32
    %c0_i32_0 = arith.constant 0 : i32
    %c0_i32_1 = arith.constant 0 : i32
    return %c0_i32, %c0_i32_0 : i32, i32
  }
  func.func @transform_4(%arg0: i32) -> (i32, i32) {
    %c0_i32 = arith.constant 0 : i32
    %c0_i32_0 = arith.constant 0 : i32
    %c0_i32_1 = arith.constant 0 : i32
    return %c0_i32, %c0_i32_0 : i32, i32
  }
  func.func @transform_5(%arg0: i32) -> (i32, i32) {
    %c0_i32 = arith.constant 0 : i32
    %c0_i32_0 = arith.constant 0 : i32
    %c0_i32_1 = arith.constant 0 : i32
    return %c0_i32, %c0_i32_0 : i32, i32
  }
  func.func @transform_6(%arg0: i32) -> (i32, i32) {
    %c0_i32 = arith.constant 0 : i32
    %c0_i32_0 = arith.constant 0 : i32
    %c0_i32_1 = arith.constant 0 : i32
    return %c0_i32, %c0_i32_0 : i32, i32
  }
  func.func @transform_7(%arg0: i32) -> (i32, i32) {
    %c0_i32 = arith.constant 0 : i32
    %c0_i32_0 = arith.constant 0 : i32
    return %c0_i32, %arg0 : i32, i32
  }
}

</mosaic_0001>

<bundles_post_ra>
// kernel: tpu_custom_call.1
= control target key start
LH: loop header
LB: loop body
LE: loop exit
PB: predicated region body
PF: predicated region fallthrough
CT: control target
= control target key end

     0   :  { %s808_s0 = inlined_call_operand.hbm [shape: f32[16,512], index: 0, kind: input, shape index: {}]   ;;  %s809_s1 = inlined_call_operand.vmem [shape: f32[15,16], index: 1, kind: input, shape index: {}]   ;;  %s810_s2 = inlined_call_operand.vmem [shape: f32[15,1], index: 2, kind: input, shape index: {}]   ;;  %s811_s3 = inlined_call_operand.vmem [shape: f32[8,15], index: 3, kind: input, shape index: {}]   ;;  %s812_s4 = inlined_call_operand.vmem [shape: f32[8,1], index: 4, kind: input, shape index: {}]   ;;  %s813_s5 = inlined_call_operand.vmem [shape: f32[1,8], index: 5, kind: input, shape index: {}]   ;;  %s814_s6 = inlined_call_operand.<no memory space> [shape: f32[1,1], index: 6, kind: input, shape index: {}]   ;;  %s815_s7 = inlined_call_operand.hbm [shape: f32[1,512], index: 7, kind: output, shape index: {}]  }
   0x1   :  { %v12_v0 = vstv %s814_s6 }
   0x2   :  { %13 = vst [vmem:[#allocation2] sm:$0x1] %v12_v0 }
   0x3   :  { %14 = vsyncpa [#allocation4], 0 }
   0x4   :  { %15 = vsyncpa [#allocation5], 0  ;;  %s704_s26 = smov [#allocation3]   ;;  %s656_s30 = scalar_lea.hbm %s808_s0, 1024 }
   0x5   :  { %s21_s27 = sshll.u32 %s704_s26, 4  ;;  %p657_p0 = scmp.ne.s32.totalorder %s808_s0, %s656_s30  ;;  %s22_s27 = int_to_ptr.vmem [resolvable:$true] %s21_s27 }
   0x6   :  { %p660_p1 = scmp.lt.u32.totalorder %s656_s30, %s808_s0 }
   0x8   :  { %p662_p2 = pnand %p660_p1, %p657_p0 }
   0xa   :  { %665 = shalt.err (!%p662_p2)
}
   0xb   :  { %s666_s6 = scalar_lea.vmem %s22_s27, 1024  ;;  %p671_p4 = scmp.lt.s32.totalorder %s22_s27, %s22_s27 }
   0xc   :  { %p667_p3 = scmp.ne.s32.totalorder %s22_s27, %s666_s6  ;;  %p672_p5 = scmp.lt.s32.totalorder %s666_s6, %s666_s6 }
   0xe   :  { %p673_p6 = por %p672_p5, %p671_p4 }
  0x10   :  { %p674_p7 = pnand %p673_p6, %p667_p3 }
  0x12   :  { %677 = shalt.err (!%p674_p7)
}
  0x13   :  { %s705_s12 = smov 512   ;;  %s706_s13 = smov 32  }
  0x14   :  { %27 = dma.hbm_to_vmem [thread:$0]  %s808_s0, 1024, %s22_s27, [#allocation4], %s705_s12, %s705_s12, %s706_s13  }
  0x15   :  { %700 = dma.done.wait [#allocation4], 1024  }
  0x16   :  { %701 = vsyncadd [#allocation4], 4294966272  ;;  %v707_v1 = vmov 0.0   ;;  %v708_v2 = vmov 0   ;;  %v44_v3 = vld [vmem:[#allocation3 + $0x8] sm:$0xff]  ;;  %v46_v5 = vld [vmem:[#allocation3 + $0x18] sm:$0xff] }
  0x17   :  { %136 = vmatprep.mubr.f32.mxu0 %v707_v1  ;;  %213 = vmatprep.mubr.f32.mxu1 %v707_v1  ;;  %v48_v4 = vld [vmem:[#allocation3 + $0x28] sm:$0xff]  ;;  %v50_v7 = vld [vmem:[#allocation3 + $0x38] sm:$0xff]  ;;  %v43_v8 = vld [vmem:[#allocation3] sm:$0xff]  ;;  %vm65_vm0 = vcmask 130048   ;;  %vm245_vm1 = vcmask 1046528   ;;  %vm709_vm2 = vmmov 1  }
  0x18   :  { %654 = vset.pattern.permute.xlu0 %v708_v2  ;;  %655 = vset.pattern.permute.xlu1 %v708_v2  ;;  %v626_v6 = vpack.c.bf16 %v48_v4, %v44_v3  ;;  %v47_v9 = vld [vmem:[#allocation3 + $0x20] sm:$0xff]  ;;  %v630_v10 = vpack.c.bf16 %v50_v7, %v46_v5  ;;  %v45_v12 = vld [vmem:[#allocation3 + $0x10] sm:$0xff]  ;;  %v405_v20 = vld [vmem:[#allocation2] sm:$0x1]  ;;  %vm241_vm4 = vcmask 121856   ;;  %vm415_vm5 = vcmask 64512  }
  0x19   :  { %v628_v11 = vpack.c.bf16 %v47_v9, %v43_v8  ;;  %v49_v13 = vld [vmem:[#allocation3 + $0x30] sm:$0xff]  ;;  %v53_v15 = vld [vmem:[%s810_s2] sm:$0xff]  ;;  %v54_v17 = vld [vmem:[%s810_s2 + $0x8] sm:$0x7f]  ;;  %v710_v5 = vmov 1966171168  }
  0x1a   :  { %627 = vmatprep.subr.bf16.mxu0 %v626_v6  ;;  %v632_v14 = vpack.c.bf16 %v49_v13, %v45_v12  ;;  %631 = vmatprep.subr.bf16.mxu1 %v630_v10  ;;  %v51_v16 = vld [vmem:[%s809_s1] sm:$0xff]  ;;  %v52_v18 = vld [vmem:[%s809_s1 + $0x8] sm:$0x7f]  ;;  %vm635_vm3 = vmpackc.low %vm245_vm1, %vm709_vm2  ;;  %v572_v6 = vunpack.c.l.s4 %v710_v5 }
  0x1b   :  { %629 = vmatpush1.bf16.msra.mxu0 %v628_v11  ;;  %57 = vperm.xlu0 %654, %v53_v15   ;;  %v235_v19 = vld [vmem:[%s812_s4] sm:$0xff] }
  0x1c   :  { %633 = vmatpush1.bf16.msra.mxu1 %v632_v14  ;;  %238 = vperm.xlu1 %655, %v235_v19   ;;  %v234_v51 = vld [vmem:[%s811_s3] sm:$0xff]  ;;  %v573_v9 = vunpack.c.0.s8 %v572_v6 }
  0x1d   :  { %v404_v0 = vld [vmem:[%s813_s5] sm:$0x1]  ;;  %s711_s5 = smov [#allocation6]  }
  0x1e   :  { %614 = vmatmul.mubr.msk.f32.vlgmr.msra.gmra.mrb[0].mxu0 %vm65_vm0, %v51_v16  ;;  %s605_s25 = sshll.u32 %s711_s5, 4  ;;  %s606_s25 = int_to_ptr.vmem [resolvable:$true] %s605_s25 }
  0x1f   :  { %616 = vmatmul.mubr.msk.f32.vlgmr.msra.gmra.mrb[0].mxu1 %vm65_vm0, %v51_v16  ;;  %142 = vmatprep.mubr.f32.mxu0 %v707_v1  ;;  %s678_s26 = scalar_lea.vmem %s606_s25, 64  ;;  %p683_p9 = scmp.lt.s32.totalorder %s606_s25, %s606_s25 }
  0x20   :  { %219 = vmatprep.mubr.f32.mxu1 %v707_v1  ;;  %62 = vperm.xlu0 %654, %v54_v17   ;;  %p679_p8 = scmp.ne.s32.totalorder %s606_s25, %s678_s26  ;;  %p684_p10 = scmp.lt.s32.totalorder %s678_s26, %s678_s26 }
  0x21   :  { %408 = vperm.xlu1 %655, %v405_v20  }
  0x22   :  { %615 = vmatmul.mubr.msk.f32.gmra.mrb[2].mxu0 %vm65_vm0, %v52_v18  ;;  %p685_p11 = por %p684_p10, %p683_p9 }
  0x23   :  { %617 = vmatmul.mubr.msk.f32.gmra.mrb[2].mxu1 %vm65_vm0, %v52_v18  ;;  %322 = vmatprep.mubr.f32.mxu0 %v707_v1 }
  0x24   :  { %393 = vmatprep.mubr.f32.mxu1 %v707_v1  ;;  %p686_p12 = pnand %p685_p11, %p679_p8 }
  0x9a   :  { %v58_v21 = vpop.permute.xlu0 %57 }
  0x9b   :  { %v239_v52 = vpop.permute.xlu1 %238 }
  0x9f   :  { %v63_v28 = vpop.permute.xlu0 %62 }
  0xa0   :  { %v409_v7 = vpop.permute.xlu1 %408 }
  0xf1   :  { %v138_v22 = vpop.f32.mrb[0].mxu0 }
  0xf2   :  { %v215_v23 = vpop.f32.mrb[0].mxu1  ;;  %v140_v24 = vpop.f32.mrb[1].mxu0  ;;  %v139_v26 = vadd.f32 %v138_v22, %v58_v21 }
  0xf3   :  { %v217_v25 = vpop.f32.mrb[1].mxu1  ;;  %v216_v27 = vadd.f32 %v215_v23, %v58_v21  ;;  %v141_v29 = vadd.f32 %v140_v24, %v58_v21 }
  0xf4   :  { %v218_v31 = vadd.f32 %v217_v25, %v58_v21  ;;  %v226_v38 = vmax.f32 %v139_v26, 0.0 }
  0xf5   :  { %v144_v30 = vpop.f32.mrb[2].mxu0  ;;  %v228_v41 = vmax.f32 %v216_v27, 0.0  ;;  %v227_v42 = vmax.f32 %v141_v29, 0.0 }
  0xf6   :  { %v145_v32 = vadd.f32 %v144_v30, %v63_v28  ;;  %v221_v33 = vpop.f32.mrb[2].mxu1  ;;  %v146_v34 = vpop.f32.mrb[3].mxu0  ;;  %v229_v45 = vmax.f32 %v218_v31, 0.0 }
  0xf7   :  { %v222_v35 = vadd.f32 %v221_v33, %v63_v28  ;;  %v147_v36 = vadd.f32 %v146_v34, %v63_v28  ;;  %v223_v37 = vpop.f32.mrb[3].mxu1 }
  0xf8   :  { %v230_v39 = vmax.f32 %v145_v32, 0.0  ;;  %v224_v40 = vadd.f32 %v223_v37, %v63_v28 }
  0xf9   :  { %v232_v43 = vmax.f32 %v222_v35, 0.0  ;;  %v231_v44 = vmax.f32 %v147_v36, 0.0 }
  0xfa   :  { %v637_v46 = vpack.c.bf16 %v230_v39, %v226_v38  ;;  %v233_v47 = vmax.f32 %v224_v40, 0.0 }
  0xfb   :  { %v643_v48 = vpack.c.bf16 %v232_v43, %v228_v41  ;;  %v634_v49 = vpack.c.bf16 %v231_v44, %v227_v42 }
  0xfc   :  { %v640_v50 = vpack.c.bf16 %v233_v47, %v229_v45 }
  0xfd   :  { %636 = vmatprep.subr.msk.bf16.mxu0 %vm635_vm3, %v634_v49 }
  0xfe   :  { %642 = vmatprep.subr.msk.bf16.mxu1 %vm635_vm3, %v640_v50  ;;  %639 = vmatpush1.bf16.msk.msra.mxu0 %vm635_vm3, %v637_v46 }
  0xff   :  { %645 = vmatpush1.bf16.msk.msra.mxu1 %vm635_vm3, %v643_v48 }
 0x101   :  { %620 = vmatmul.mubr.msk.f32.vlgmr.msra.gmra.mrb[4].mxu0 %vm241_vm4, %v234_v51 }
 0x102   :  { %623 = vmatmul.mubr.msk.f32.vlgmr.msra.gmra.mrb[4].mxu1 %vm241_vm4, %v234_v51  ;;  %483 = vmatprep.mubr.f32.mxu0 %v707_v1 }
 0x103   :  { %554 = vmatprep.mubr.f32.mxu1 %v707_v1  ;;  %v411_v1 = vlaneseq }
 0x105   :  { %v412_v3 = vshrl.u32 %v411_v1, 7  ;;  %vm596_vm6 = vcmp.lt.s32.totalorder %v411_v1, 512 }
 0x107   :  { %v413_v4 = vsub.s32 0, %v412_v3  ;;  %v576_v19 = vsub.s32 %v573_v9, %v412_v3 }
 0x109   :  { %v414_v8 = vrot.slane %v409_v7, %v413_v4 }
 0x1d4   :  { %v324_v53 = vpop.f32.mrb[4].mxu0 }
 0x1d5   :  { %v325_v54 = vadd.f32 %v324_v53, %v239_v52  ;;  %v395_v55 = vpop.f32.mrb[4].mxu1  ;;  %v326_v56 = vpop.f32.mrb[5].mxu0 }
 0x1d6   :  { %v396_v57 = vadd.f32 %v395_v55, %v239_v52  ;;  %v327_v58 = vadd.f32 %v326_v56, %v239_v52  ;;  %v397_v59 = vpop.f32.mrb[5].mxu1 }
 0x1d7   :  { %v398_v60 = vadd.f32 %v397_v59, %v239_v52  ;;  %v400_v62 = vmax.f32 %v325_v54, 0.0 }
 0x1d8   :  { %v401_v61 = vmax.f32 %v327_v58, 0.0  ;;  %v402_v2 = vmax.f32 %v396_v57, 0.0 }
 0x1d9   :  { %v403_v63 = vmax.f32 %v398_v60, 0.0 }
 0x1da   :  { %419 = vmatprep.subr.mxu0 %v401_v61 }
 0x1db   :  { %490 = vmatprep.subr.mxu1 %v403_v63  ;;  %420 = vmatpush1.msra.mxu0 %v400_v62 }
 0x1dc   :  { %491 = vmatpush1.msra.mxu1 %v402_v2  ;;  %624 = vmatmul.mubr.msk.f32.vlgmr.msra.gmra.mrb[6].mxu0 %vm415_vm5, %v404_v0 }
 0x1dd   :  { %625 = vmatmul.mubr.msk.f32.vlgmr.msra.gmra.mrb[6].mxu1 %vm415_vm5, %v404_v0 }
 0x2af   :  { %v485_v10 = vpop.f32.mrb[6].mxu0 }
 0x2b0   :  { %v486_v11 = vadd.f32 %v485_v10, %v414_v8  ;;  %v556_v12 = vpop.f32.mrb[6].mxu1  ;;  %v487_v13 = vpop.f32.mrb[7].mxu0 }
 0x2b1   :  { %v557_v14 = vadd.f32 %v556_v12, %v414_v8  ;;  %v488_v15 = vadd.f32 %v487_v13, %v414_v8  ;;  %v558_v16 = vpop.f32.mrb[7].mxu1 }
 0x2b2   :  { %v561_v17 = vmax.f32 %v486_v11, 0.0  ;;  %v559_v18 = vadd.f32 %v558_v16, %v414_v8 }
 0x2b3   :  { %v563_v20 = vmax.f32 %v557_v14, 0.0  ;;  %v562_v21 = vmax.f32 %v488_v15, 0.0 }
 0x2b4   :  { %v564_v22 = vmax.f32 %v559_v18, 0.0 }
 0x2b5   :  { %v569_v23 = vcombine.low %v561_v17, %v562_v21 }
 0x2b6   :  { %v570_v24 = vcombine.low %v563_v20, %v564_v22 }
 0x2b7   :  { %v577_v25 = vrot.slane %v569_v23, %v576_v19 }
 0x2b8   :  { %v584_v26 = vrot.slane %v570_v24, %v576_v19 }
 0x2ba   :  { %v585_v27 = vcombine.low %v577_v25, %v584_v26 }
 0x2bc   :  { %v592_v28 = vrot.slane %v585_v27, %v576_v19 }
 0x2be   :  { %598 = vst.msk [vmem:[#allocation6] sm:$0xf] %vm596_vm6, %v592_v28 }
 0x2bf   :  { %689 = shalt.err (!%p686_p12)
}
 0x2c0   :  { %s690_s29 = scalar_lea.hbm %s815_s7, 64 }
 0x2c1   :  { %p691_p13 = scmp.ne.s32.totalorder %s815_s7, %s690_s29  ;;  %p694_p0 = scmp.lt.u32.totalorder %s690_s29, %s815_s7 }
 0x2c3   :  { %p696_p1 = pnand %p694_p0, %p691_p13 }
 0x2c5   :  { %699 = shalt.err (!%p696_p1)
}
 0x2c6   :  { %608 = dma.vmem_to_hbm [thread:$0]  %s606_s25, 64, %s815_s7, [#allocation5]  }
 0x2c7   :  { %702 = dma.done.wait [#allocation5], 64  }
 0x2c8   :  { %703 = vsyncadd [#allocation5], 4294967232 }
 0x2c9   :  { %612 = vsyncpa [#allocation4], 1 }
 0x2ca   :  { %613 = vsyncpa [#allocation5], 1 }

</bundles_post_ra>
